<compile_context>
chip_gen: v5e
topology: v5e:2x2
jax: 0.10.0
libtpu: 0.0.40
codegen_flags: <defaults>
</compile_context>

<pallas_src>
import functools

import jax
import jax.numpy as jnp
from jax.experimental import pallas as pl
from jax.experimental.pallas import tpu as pltpu


_BN_EPS = 1e-5
_INV_SQRT2 = 0.7071067811865476


def _round_up(x, m):
    return ((x + m - 1) // m) * m


def _make_kernel(tile_rows, in_dim, n_rows, needs_mask):
    """Build the fused kernel with static tile / batch metadata closed over."""
    inv_n = 1.0 / float(n_rows)

    def kernel(x_ref, w1_ref, b1_ref, w2_ref, b2_ref, o_ref,
               sum_ref, sq_ref, inv_ref, bias_ref):
        phase = pl.program_id(0)
        tile = pl.program_id(1)

        # ---- fc1 on the VPU: K == in_dim is tiny, the MXU would be >98% idle.
        x = x_ref[...].astype(jnp.float32)
        h = x[:, 0:1] * w1_ref[0:1, :] + b1_ref[...]
        for k in range(1, in_dim):
            h = h + x[:, k:k + 1] * w1_ref[k:k + 1, :]

        # Exact GELU (matches PyTorch nn.GELU default).
        h = 0.5 * h * (1.0 + jax.lax.erf(h * _INV_SQRT2))

        # ---- phase 0: accumulate batch statistics --------------------------
        @pl.when(phase == 0)
        def _():
            @pl.when(tile == 0)
            def _():
                sum_ref[...] = jnp.zeros_like(sum_ref)
                sq_ref[...] = jnp.zeros_like(sq_ref)

            if needs_mask:
                row = tile * tile_rows + jax.lax.broadcasted_iota(
                    jnp.int32, (tile_rows, 1), 0)
                hm = jnp.where(row < n_rows, h, 0.0)
            else:
                hm = h
            sum_ref[...] += jnp.sum(hm, axis=0, keepdims=True)
            sq_ref[...] += jnp.sum(hm * hm, axis=0, keepdims=True)

        # ---- phase 1: finalize stats once, normalize + fc2, store ----------
        @pl.when(phase == 1)
        def _():
            @pl.when(tile == 0)
            def _():
                mean = sum_ref[...] * inv_n
                var = jnp.maximum(sq_ref[...] * inv_n - mean * mean, 0.0)
                inv_std = jax.lax.rsqrt(var + _BN_EPS)
                inv_ref[...] = inv_std
                # Effective bias: b2' - (mean * inv_std) @ w2'. LHS is
                # broadcast to 8 sublanes so this tiny one-time matmul is
                # tile-aligned, then row 0 is taken.
                ms = jnp.broadcast_to(mean * inv_std, (8, mean.shape[1]))
                corr = jnp.dot(ms, w2_ref[...],
                               preferred_element_type=jnp.float32)[0:1, :]
                bias_ref[...] = b2_ref[...] - corr

            # Only one VPU op per element for BN (inv_std scale); mean, gamma,
            # beta already folded into bias_ref / w2_ref.
            hn = h * inv_ref[...]
            y = jnp.dot(hn, w2_ref[...], preferred_element_type=jnp.float32)
            o_ref[...] = (y + bias_ref[...]).astype(o_ref.dtype)

    return kernel


def loc_embed_forward(x, params, *, tile_rows=None):
    """x: (N, input_dim) float32. Returns (N, embed_dim) float32."""
    w1, b1, gamma, beta, w2, b2 = params
    n, in_dim = x.shape
    hid = w1.shape[1]
    emb = w2.shape[1]

    # Static folds of the BN affine into fc2 (done once, outside the kernel).
    w2g = (w2 * gamma.reshape(hid, 1)).astype(jnp.float32)   # row-scaled w2
    b2p = (b2 + beta @ w2).astype(jnp.float32)                # (1, emb)

    # Batch tiling: cap at 512 rows -> VMEM use stays tiny on v5e/v6e/v7x and
    # the x / out DMAs get double-buffered by the BlockSpec pipeline.
    if tile_rows is None:
        tile_rows = min(512, _round_up(n, 8))
    tile_rows = _round_up(int(tile_rows), 8)
    n_pad = _round_up(n, tile_rows)
    num_tiles = n_pad // tile_rows
    needs_mask = (n_pad != n)

    x_pad = jnp.pad(x, ((0, n_pad - n), (0, 0))) if needs_mask else x

    grid_spec = pltpu.PrefetchScalarGridSpec(
        num_scalar_prefetch=0,
        grid=(2, num_tiles),                       # (phase, batch tile)
        in_specs=[
            # streamed activations
            pl.BlockSpec((tile_rows, in_dim), lambda p, t: (t, 0)),
            # parameters: constant index_maps -> resident in VMEM across tiles
            pl.BlockSpec((in_dim, hid), lambda p, t: (0, 0)),
            pl.BlockSpec((1, hid), lambda p, t: (0, 0)),
            pl.BlockSpec((hid, emb), lambda p, t: (0, 0)),
            pl.BlockSpec((1, emb), lambda p, t: (0, 0)),
        ],
        # Block index is constant (0) through phase 0 (no garbage write-back),
        # then t during phase 1.
        out_specs=pl.BlockSpec((tile_rows, emb), lambda p, t: (t * p, 0)),
        scratch_shapes=[
            pltpu.VMEM((1, hid), jnp.float32),   # sum
            pltpu.VMEM((1, hid), jnp.float32),   # sum of squares
            pltpu.VMEM((1, hid), jnp.float32),   # inv_std
            pltpu.VMEM((1, emb), jnp.float32),   # effective fc2 bias
        ],
    )

    out = pl.pallas_call(
        _make_kernel(tile_rows, in_dim, n, needs_mask),
        out_shape=jax.ShapeDtypeStruct((n_pad, emb), jnp.float32),
        grid_spec=grid_spec,
        # Both axes are sequential: phase 1 depends on the stats accumulated
        # across all phase-0 batch tiles.
        compiler_params=pltpu.CompilerParams(
            dimension_semantics=("arbitrary", "arbitrary")),
    )(x_pad, w1, b1, w2g, b2p)

    return out[:n] if needs_mask else out


def init_loc_embed_params(key, input_dim=2, embed_dim=64):
    """Deterministic init mirroring PyTorch Linear / BatchNorm1d defaults."""
    k1, k2, k3, k4 = jax.random.split(key, 4)
    bound1 = 1.0 / jnp.sqrt(jnp.float32(input_dim))
    bound2 = 1.0 / jnp.sqrt(jnp.float32(embed_dim))
    # stored as (in, out) so the kernel computes x @ W
    w1 = jax.random.uniform(k1, (input_dim, embed_dim), jnp.float32, -bound1, bound1)
    b1 = jax.random.uniform(k2, (1, embed_dim), jnp.float32, -bound1, bound1)
    w2 = jax.random.uniform(k3, (embed_dim, embed_dim), jnp.float32, -bound2, bound2)
    b2 = jax.random.uniform(k4, (1, embed_dim), jnp.float32, -bound2, bound2)
    gamma = jnp.ones((1, embed_dim), jnp.float32)   # BatchNorm1d weight
    beta = jnp.zeros((1, embed_dim), jnp.float32)   # BatchNorm1d bias
    return (w1, b1, gamma, beta, w2, b2)


def loc_embed_reference(x, params):
    """Pure-JAX reference of the PyTorch forward (training-mode BN)."""
    w1, b1, gamma, beta, w2, b2 = params
    h = x @ w1 + b1
    h = 0.5 * h * (1.0 + jax.lax.erf(h * _INV_SQRT2))
    mean = jnp.mean(h, axis=0, keepdims=True)
    var = jnp.mean((h - mean) ** 2, axis=0, keepdims=True)
    h = (h - mean) / jnp.sqrt(var + _BN_EPS)
    h = h * gamma + beta
    return h @ w2 + b2


if __name__ == "__main__":
    key = jax.random.PRNGKey(0)
    kx, kp, kx2, kx3 = jax.random.split(key, 4)

    input_dim, embed_dim = 2, 64
    params = init_loc_embed_params(kp, input_dim=input_dim, embed_dim=embed_dim)

    # Primary small test (matches the module's toy shapes).
    batch = 8
    x = jax.random.normal(kx, (batch, input_dim), jnp.float32)
    out = jax.block_until_ready(loc_embed_forward(x, params))
    ref = loc_embed_reference(x, params)
    assert out.shape == (batch, embed_dim)
    assert jnp.allclose(out, ref, atol=1e-4, rtol=1e-4), "mismatch (batch=8)"

    # Non-multiple-of-8 batch: exercises padding + masked statistics.
    x2 = jax.random.normal(kx2, (20, input_dim), jnp.float32)
    out2 = jax.block_until_ready(loc_embed_forward(x2, params))
    ref2 = loc_embed_reference(x2, params)
    assert jnp.allclose(out2, ref2, atol=5e-4, rtol=5e-4), "mismatch (batch=20)"

    # Multi-tile batch: exercises the two-phase grid with several batch tiles.
    x3 = jax.random.normal(kx3, (600, input_dim), jnp.float32)
    out3 = jax.block_until_ready(loc_embed_forward(x3, params, tile_rows=256))
    ref3 = loc_embed_reference(x3, params)
    assert jnp.allclose(out3, ref3, atol=5e-4, rtol=5e-4), "mismatch (batch=600)"

    print("KERNEL_OK")
</pallas_src>

<mosaic_0001>
module attributes {stable_mosaic.version = 11 : i64} {
  func.func @kernel(%arg0: i32, %arg1: i32, %arg2: memref<8x2xf32, #tpu.memory_space<vmem>>, %arg3: memref<2x64xf32, #tpu.memory_space<vmem>>, %arg4: memref<1x64xf32, #tpu.memory_space<vmem>>, %arg5: memref<64x64xf32, #tpu.memory_space<vmem>>, %arg6: memref<1x64xf32, #tpu.memory_space<vmem>>, %arg7: memref<8x64xf32, #tpu.memory_space<vmem>>, %arg8: memref<1x64xf32, #tpu.memory_space<vmem>>, %arg9: memref<1x64xf32, #tpu.memory_space<vmem>>, %arg10: memref<1x64xf32, #tpu.memory_space<vmem>>, %arg11: memref<1x64xf32, #tpu.memory_space<vmem>>) attributes {dimension_semantics = [#tpu.dimension_semantics<arbitrary>, #tpu.dimension_semantics<arbitrary>], iteration_bounds = array<i64: 2, 1>, scalar_prefetch = 0 : i64, scratch_operands = 4 : i64, tpu.core_type = #tpu.core_type<tc>, window_params = [{transform_indices = @transform_0, window_bounds = array<i64: 8, 2>}, {pipeline_mode = #tpu.pipeline_mode<synchronous>, transform_indices = @transform_1, window_bounds = array<i64: 2, 64>}, {pipeline_mode = #tpu.pipeline_mode<synchronous>, transform_indices = @transform_2, window_bounds = array<i64: 1, 64>}, {pipeline_mode = #tpu.pipeline_mode<synchronous>, transform_indices = @transform_3, window_bounds = array<i64: 64, 64>}, {pipeline_mode = #tpu.pipeline_mode<synchronous>, transform_indices = @transform_4, window_bounds = array<i64: 1, 64>}, {transform_indices = @transform_5, window_bounds = array<i64: 8, 64>}]} {
    %c0 = arith.constant 0 : index
    %c0_0 = arith.constant 0 : index
    %0 = vector.load %arg2[%c0, %c0_0] : memref<8x2xf32, #tpu.memory_space<vmem>>, vector<8x2xf32>
    %1 = vector.extract_strided_slice %0 {offsets = [0, 0], sizes = [8, 1], strides = [1, 1]} : vector<8x2xf32> to vector<8x1xf32>
    %c0_1 = arith.constant 0 : index
    %c0_2 = arith.constant 0 : index
    %2 = vector.load %arg3[%c0_1, %c0_2] : memref<2x64xf32, #tpu.memory_space<vmem>>, vector<1x64xf32>
    %3 = vector.broadcast %1 : vector<8x1xf32> to vector<8x64xf32>
    %4 = vector.broadcast %2 : vector<1x64xf32> to vector<8x64xf32>
    %5 = arith.mulf %3, %4 : vector<8x64xf32>
    %c0_3 = arith.constant 0 : index
    %c0_4 = arith.constant 0 : index
    %6 = vector.load %arg4[%c0_3, %c0_4] : memref<1x64xf32, #tpu.memory_space<vmem>>, vector<1x64xf32>
    %7 = vector.broadcast %6 : vector<1x64xf32> to vector<8x64xf32>
    %8 = arith.addf %5, %7 : vector<8x64xf32>
    %9 = vector.extract_strided_slice %0 {offsets = [0, 1], sizes = [8, 1], strides = [1, 1]} : vector<8x2xf32> to vector<8x1xf32>
    %c1 = arith.constant 1 : index
    %c0_5 = arith.constant 0 : index
    %10 = vector.load %arg3[%c1, %c0_5] : memref<2x64xf32, #tpu.memory_space<vmem>>, vector<1x64xf32>
    %11 = vector.broadcast %9 : vector<8x1xf32> to vector<8x64xf32>
    %12 = vector.broadcast %10 : vector<1x64xf32> to vector<8x64xf32>
    %13 = arith.mulf %11, %12 : vector<8x64xf32>
    %14 = arith.addf %8, %13 : vector<8x64xf32>
    %cst = arith.constant 5.000000e-01 : f32
    %15 = vector.broadcast %cst : f32 to vector<8x64xf32>
    %16 = arith.mulf %15, %14 : vector<8x64xf32>
    %cst_6 = arith.constant 0.707106769 : f32
    %17 = vector.broadcast %cst_6 : f32 to vector<8x64xf32>
    %18 = arith.mulf %14, %17 : vector<8x64xf32>
    %19 = math.erf %18 : vector<8x64xf32>
    %cst_7 = arith.constant 1.000000e+00 : f32
    %20 = vector.broadcast %cst_7 : f32 to vector<8x64xf32>
    %21 = arith.addf %20, %19 : vector<8x64xf32>
    %22 = arith.mulf %16, %21 : vector<8x64xf32>
    %c0_i32 = arith.constant 0 : i32
    %23 = arith.cmpi eq, %arg0, %c0_i32 : i32
    %24 = arith.extui %23 : i1 to i32
    %c0_i32_8 = arith.constant 0 : i32
    %25 = arith.cmpi ne, %24, %c0_i32_8 : i32
    scf.if %25 {
      %c0_i32_10 = arith.constant 0 : i32
      %29 = arith.cmpi eq, %arg1, %c0_i32_10 : i32
      %30 = arith.extui %29 : i1 to i32
      %c0_i32_11 = arith.constant 0 : i32
      %31 = arith.cmpi ne, %30, %c0_i32_11 : i32
      scf.if %31 {
        %cst_22 = arith.constant 0.000000e+00 : f32
        %43 = vector.broadcast %cst_22 : f32 to vector<1x64xf32>
        %c0_23 = arith.constant 0 : index
        %c0_24 = arith.constant 0 : index
        %44 = vector.load %arg8[%c0_23, %c0_24] : memref<1x64xf32, #tpu.memory_space<vmem>>, vector<1x64xf32>
        tpu.vector_store %arg8[%c0_23, %c0_24], %43 {strides = array<i32>} : memref<1x64xf32, #tpu.memory_space<vmem>>, vector<1x64xf32>,
        %cst_25 = arith.constant 0.000000e+00 : f32
        %45 = vector.broadcast %cst_25 : f32 to vector<1x64xf32>
        %c0_26 = arith.constant 0 : index
        %c0_27 = arith.constant 0 : index
        %46 = vector.load %arg9[%c0_26, %c0_27] : memref<1x64xf32, #tpu.memory_space<vmem>>, vector<1x64xf32>
        tpu.vector_store %arg9[%c0_26, %c0_27], %45 {strides = array<i32>} : memref<1x64xf32, #tpu.memory_space<vmem>>, vector<1x64xf32>,
      } else {
      }
      %c0_12 = arith.constant 0 : index
      %c0_13 = arith.constant 0 : index
      %32 = vector.load %arg8[%c0_12, %c0_13] : memref<1x64xf32, #tpu.memory_space<vmem>>, vector<1x64xf32>
      %cst_14 = arith.constant dense<0.000000e+00> : vector<64xf32>
      %33 = vector.multi_reduction <add>, %22, %cst_14 [0] : vector<8x64xf32> to vector<64xf32>
      %34 = vector.shape_cast %33 : vector<64xf32> to vector<1x64xf32>
      %35 = arith.addf %32, %34 : vector<1x64xf32>
      %c0_15 = arith.constant 0 : index
      %c0_16 = arith.constant 0 : index
      %36 = vector.load %arg8[%c0_15, %c0_16] : memref<1x64xf32, #tpu.memory_space<vmem>>, vector<1x64xf32>
      tpu.vector_store %arg8[%c0_15, %c0_16], %35 {strides = array<i32>} : memref<1x64xf32, #tpu.memory_space<vmem>>, vector<1x64xf32>,
      %c0_17 = arith.constant 0 : index
      %c0_18 = arith.constant 0 : index
      %37 = vector.load %arg9[%c0_17, %c0_18] : memref<1x64xf32, #tpu.memory_space<vmem>>, vector<1x64xf32>
      %38 = arith.mulf %22, %22 : vector<8x64xf32>
      %cst_19 = arith.constant dense<0.000000e+00> : vector<64xf32>
      %39 = vector.multi_reduction <add>, %38, %cst_19 [0] : vector<8x64xf32> to vector<64xf32>
      %40 = vector.shape_cast %39 : vector<64xf32> to vector<1x64xf32>
      %41 = arith.addf %37, %40 : vector<1x64xf32>
      %c0_20 = arith.constant 0 : index
      %c0_21 = arith.constant 0 : index
      %42 = vector.load %arg9[%c0_20, %c0_21] : memref<1x64xf32, #tpu.memory_space<vmem>>, vector<1x64xf32>
      tpu.vector_store %arg9[%c0_20, %c0_21], %41 {strides = array<i32>} : memref<1x64xf32, #tpu.memory_space<vmem>>, vector<1x64xf32>,
    } else {
    }
    %c1_i32 = arith.constant 1 : i32
    %26 = arith.cmpi eq, %arg0, %c1_i32 : i32
    %27 = arith.extui %26 : i1 to i32
    %c0_i32_9 = arith.constant 0 : i32
    %28 = arith.cmpi ne, %27, %c0_i32_9 : i32
    scf.if %28 {
      %c0_i32_10 = arith.constant 0 : i32
      %29 = arith.cmpi eq, %arg1, %c0_i32_10 : i32
      %30 = arith.extui %29 : i1 to i32
      %c0_i32_11 = arith.constant 0 : i32
      %31 = arith.cmpi ne, %30, %c0_i32_11 : i32
      scf.if %31 {
        %c0_21 = arith.constant 0 : index
        %c0_22 = arith.constant 0 : index
        %41 = vector.load %arg8[%c0_21, %c0_22] : memref<1x64xf32, #tpu.memory_space<vmem>>, vector<1x64xf32>
        %cst_23 = arith.constant 1.250000e-01 : f32
        %42 = vector.broadcast %cst_23 : f32 to vector<1x64xf32>
        %43 = arith.mulf %41, %42 : vector<1x64xf32>
        %c0_24 = arith.constant 0 : index
        %c0_25 = arith.constant 0 : index
        %44 = vector.load %arg9[%c0_24, %c0_25] : memref<1x64xf32, #tpu.memory_space<vmem>>, vector<1x64xf32>
        %cst_26 = arith.constant 1.250000e-01 : f32
        %45 = vector.broadcast %cst_26 : f32 to vector<1x64xf32>
        %46 = arith.mulf %44, %45 : vector<1x64xf32>
        %47 = arith.mulf %43, %43 : vector<1x64xf32>
        %48 = arith.subf %46, %47 : vector<1x64xf32>
        %cst_27 = arith.constant 0.000000e+00 : f32
        %49 = vector.broadcast %cst_27 : f32 to vector<1x64xf32>
        %50 = arith.maximumf %48, %49 : vector<1x64xf32>
        %cst_28 = arith.constant 9.99999974E-6 : f32
        %51 = vector.broadcast %cst_28 : f32 to vector<1x64xf32>
        %52 = arith.addf %50, %51 : vector<1x64xf32>
        %53 = math.rsqrt %52 : vector<1x64xf32>
        %c0_29 = arith.constant 0 : index
        %c0_30 = arith.constant 0 : index
        %54 = vector.load %arg10[%c0_29, %c0_30] : memref<1x64xf32, #tpu.memory_space<vmem>>, vector<1x64xf32>
        tpu.vector_store %arg10[%c0_29, %c0_30], %53 {strides = array<i32>} : memref<1x64xf32, #tpu.memory_space<vmem>>, vector<1x64xf32>,
        %55 = arith.mulf %43, %53 : vector<1x64xf32>
        %56 = vector.shape_cast %55 : vector<1x64xf32> to vector<1x64xf32>
        %57 = vector.broadcast %56 : vector<1x64xf32> to vector<8x64xf32>
        %c0_31 = arith.constant 0 : index
        %c0_32 = arith.constant 0 : index
        %58 = vector.load %arg5[%c0_31, %c0_32] : memref<64x64xf32, #tpu.memory_space<vmem>>, vector<64x64xf32>
        %cst_33 = arith.constant dense<0.000000e+00> : vector<8x64xf32>
        %59 = tpu.matmul %57, %58, %cst_33 {dimension_numbers = #tpu.dot_dimension_numbers<[1], [0], [0], [1], [0, 0, 1, 1], [], []>} : vector<8x64xf32>, vector<64x64xf32>, vector<8x64xf32> -> vector<8x64xf32>
        %60 = vector.extract_strided_slice %59 {offsets = [0, 0], sizes = [1, 64], strides = [1, 1]} : vector<8x64xf32> to vector<1x64xf32>
        %c0_34 = arith.constant 0 : index
        %c0_35 = arith.constant 0 : index
        %61 = vector.load %arg6[%c0_34, %c0_35] : memref<1x64xf32, #tpu.memory_space<vmem>>, vector<1x64xf32>
        %62 = arith.subf %61, %60 : vector<1x64xf32>
        %c0_36 = arith.constant 0 : index
        %c0_37 = arith.constant 0 : index
        %63 = vector.load %arg11[%c0_36, %c0_37] : memref<1x64xf32, #tpu.memory_space<vmem>>, vector<1x64xf32>
        tpu.vector_store %arg11[%c0_36, %c0_37], %62 {strides = array<i32>} : memref<1x64xf32, #tpu.memory_space<vmem>>, vector<1x64xf32>,
      } else {
      }
      %c0_12 = arith.constant 0 : index
      %c0_13 = arith.constant 0 : index
      %32 = vector.load %arg10[%c0_12, %c0_13] : memref<1x64xf32, #tpu.memory_space<vmem>>, vector<1x64xf32>
      %33 = vector.broadcast %32 : vector<1x64xf32> to vector<8x64xf32>
      %34 = arith.mulf %22, %33 : vector<8x64xf32>
      %c0_14 = arith.constant 0 : index
      %c0_15 = arith.constant 0 : index
      %35 = vector.load %arg5[%c0_14, %c0_15] : memref<64x64xf32, #tpu.memory_space<vmem>>, vector<64x64xf32>
      %cst_16 = arith.constant dense<0.000000e+00> : vector<8x64xf32>
      %36 = tpu.matmul %34, %35, %cst_16 {dimension_numbers = #tpu.dot_dimension_numbers<[1], [0], [0], [1], [0, 0, 1, 1], [], []>} : vector<8x64xf32>, vector<64x64xf32>, vector<8x64xf32> -> vector<8x64xf32>
      %c0_17 = arith.constant 0 : index
      %c0_18 = arith.constant 0 : index
      %37 = vector.load %arg11[%c0_17, %c0_18] : memref<1x64xf32, #tpu.memory_space<vmem>>, vector<1x64xf32>
      %38 = vector.broadcast %37 : vector<1x64xf32> to vector<8x64xf32>
      %39 = arith.addf %36, %38 : vector<8x64xf32>
      %c0_19 = arith.constant 0 : index
      %c0_20 = arith.constant 0 : index
      %40 = vector.load %arg7[%c0_19, %c0_20] : memref<8x64xf32, #tpu.memory_space<vmem>>, vector<8x64xf32>
      tpu.vector_store %arg7[%c0_19, %c0_20], %39 {strides = array<i32>} : memref<8x64xf32, #tpu.memory_space<vmem>>, vector<8x64xf32>,
    } else {
    }
    return
  }
  func.func @transform_0(%arg0: i32, %arg1: i32) -> (i32, i32) {
    %c0_i32 = arith.constant 0 : i32
    %c0_i32_0 = arith.constant 0 : i32
    return %arg1, %c0_i32 : i32, i32
  }
  func.func @transform_1(%arg0: i32, %arg1: i32) -> (i32, i32) {
    %c0_i32 = arith.constant 0 : i32
    %c0_i32_0 = arith.constant 0 : i32
    %c0_i32_1 = arith.constant 0 : i32
    return %c0_i32, %c0_i32_0 : i32, i32
  }
  func.func @transform_2(%arg0: i32, %arg1: i32) -> (i32, i32) {
    %c0_i32 = arith.constant 0 : i32
    %c0_i32_0 = arith.constant 0 : i32
    %c0_i32_1 = arith.constant 0 : i32
    return %c0_i32, %c0_i32_0 : i32, i32
  }
  func.func @transform_3(%arg0: i32, %arg1: i32) -> (i32, i32) {
    %c0_i32 = arith.constant 0 : i32
    %c0_i32_0 = arith.constant 0 : i32
    %c0_i32_1 = arith.constant 0 : i32
    return %c0_i32, %c0_i32_0 : i32, i32
  }
  func.func @transform_4(%arg0: i32, %arg1: i32) -> (i32, i32) {
    %c0_i32 = arith.constant 0 : i32
    %c0_i32_0 = arith.constant 0 : i32
    %c0_i32_1 = arith.constant 0 : i32
    return %c0_i32, %c0_i32_0 : i32, i32
  }
  func.func @transform_5(%arg0: i32, %arg1: i32) -> (i32, i32) {
    %0 = arith.muli %arg1, %arg0 : i32
    %c0_i32 = arith.constant 0 : i32
    %c0_i32_0 = arith.constant 0 : i32
    return %0, %c0_i32 : i32, i32
  }
}

</mosaic_0001>

<bundles_post_ra>
// kernel: tpu_custom_call.1
= control target key start
LH: loop header
LB: loop body
LE: loop exit
PB: predicated region body
PF: predicated region fallthrough
CT: control target
= control target key end

     0   :  { %10 = vsyncpa [#allocation7], 0  ;;  %s845_s0 = inlined_call_operand.vmem [shape: f32[8,2], index: 0, kind: input, shape index: {}]   ;;  %s846_s1 = inlined_call_operand.vmem [shape: f32[2,64], index: 1, kind: input, shape index: {}]   ;;  %s847_s2 = inlined_call_operand.vmem [shape: f32[1,64], index: 2, kind: input, shape index: {}]   ;;  %s848_s3 = inlined_call_operand.hbm [shape: f32[64,64], index: 3, kind: input, shape index: {}]   ;;  %s849_s4 = inlined_call_operand.vmem [shape: f32[1,64], index: 4, kind: input, shape index: {}]   ;;  %s850_s5 = inlined_call_operand.hbm [shape: f32[8,64], index: 5, kind: output, shape index: {}]  }
   0x1   :  { %11 = vsyncpa [#allocation8], 0 }
   0x2   :  { %13 = vsyncpa [#allocation8 + $0x1], 0  ;;  %s764_s18 = smov 0   ;;  %s766_s19 = smov 0  }
   0x3   :  { %s768_s20 = smov 0  }
   0x4 LB: > { %s558_s21 = sadd.s32 4294967295, %s725_s20   ;;  %s559_s22 = sadd.s32 4294967294, %s725_s20   ;;  %s725_s20 = sphi %s768_s20, %s19_s20   ;;  %s721_s19 = sphi %s766_s19, %s853_s19   ;;  %s717_s18 = sphi %s764_s18, %s852_s18  }
   0x5   : > { %s31_s23 = sadd.s32 1, %s721_s19  ;;  %p560_p0 = scmp.ge.s32.totalorder %s725_s20, 1 }
   0x6   : > { %p33_p1 = scmp.ge.s32.totalorder %s31_s23, 2  ;;  %p174_p2 = scmp.lt.s32.totalorder %s725_s20, 3 }
   0x7   : > { %p786_p3 = scmp.eq.s32.totalorder %s558_s21, 0  ;;  %s198_s27 = sshll.u32 %s848_s3, 4  ;;  %s199_s27 = int_to_ptr.hbm [resolvable:$true] %s198_s27 }
   0x8   : > { %s855_s23 = smov (%p33_p1, %s31_s23), 0  ;;  %p175_p4 = pnand %p560_p0, %p174_p2 }
   0x9   : > { %s727_s28 = smov [#allocation6]   ;;  %s728_s30 = smov 128  }
   0xa   : > { %p582_p5 = pneg %p175_p4  ;;  %s200_s29 = sshll.u32 %s727_s28, 4  ;;  %s201_s29 = int_to_ptr.vmem [resolvable:$true] %s200_s29 }
   0xb   : > { %s729_s6 = smov 8   ;;  %219 = sbr.rel (%p175_p4) target bundleno = 400 (0x190), region = 40 }
   0xc   : > { %p583_p6 = pnand %p786_p3, %p582_p5 }
   0xe   : > { %585 = dma.hbm_to_vmem [thread:$0]  (!%p583_p6), %s199_s27, 1024, %s201_s29, [#allocation7], %s728_s30, %s728_s30, %s729_s6  }
  0x10   : > { %708 = dma.done.wait (%p786_p3), [#allocation7], 1024  }
  0x11   : > { %710 = vsyncadd (%p786_p3), [#allocation7], 4294966272  ;;  %v730_v0 = vmov 0   ;;  %v252_v1 = vld [vmem:[%s845_s0] sm:$0xff]  ;;  %v731_v2 = vmov 1   ;;  %p566_p7 = scmp.ne.s32.totalorder %s717_s18, 0 }
  0x12   : > { %626 = vset.pattern.permute.xlu0 %v730_v0  ;;  %v628_v4 = vld [vmem:[%s846_s1] ss:$0 sm:$0xff]  ;;  %v630_v7 = vld [vmem:[%s846_s1 + $0x1] ss:$0 sm:$0xff] }
  0x13   : > { %256 = vperm.xlu0 %626, %v252_v1   ;;  %v629_v5 = vld [vmem:[%s847_s2] ss:$0 sm:$0xff] }
  0x1b   : > { %627 = vset.pattern.permute.xlu0 %v731_v2 }
  0x1c   : > { %268 = vperm.xlu0 %627, %v252_v1  }
  0x85   : > { %v257_v3 = vpop.permute.xlu0 %256 }
  0x86   : > { %v260_v6 = vmul.f32 %v628_v4, %v257_v3 }
  0x88   : > { %v265_v9 = vadd.f32 %v629_v5, %v260_v6 }
  0x8e   : > { %v269_v8 = vpop.permute.xlu0 %268 }
  0x8f   : > { %v272_v10 = vmul.f32 %v630_v7, %v269_v8 }
  0x91   : > { %v273_v11 = vadd.f32 %v272_v10, %v265_v9 }
  0x93   : > { %v275_v12 = vmul.f32 0.70710677, %v273_v11  ;;  %v274_v48 = vmul.f32 0.5, %v273_v11 }
  0x95   : > { %v276_v13 = vmul.f32 %v275_v12, %v275_v12 }
  0x97   : > { %v277_v14 = vmin.f32 %v276_v13, 16.0 }
  0x99   : > { %v278_v15 = vmul.f32 2.1237322e-06, %v277_v14  ;;  %v289_v16 = vmul.f32 3.8918573e-05, %v277_v14 }
  0x9b   : > { %v279_v17 = vadd.f32 0.00028619796, %v278_v15  ;;  %v290_v18 = vadd.f32 0.001143296, %v289_v16 }
  0x9d   : > { %v280_v19 = vmul.f32 %v279_v17, %v277_v14  ;;  %v291_v20 = vmul.f32 %v290_v18, %v277_v14 }
  0x9f   : > { %v292_v21 = vadd.f32 0.014752088, %v291_v20  ;;  %v281_v22 = vadd.f32 0.0036580483, %v280_v19 }
  0xa1   : > { %v293_v23 = vmul.f32 %v292_v21, %v277_v14  ;;  %v282_v25 = vmul.f32 %v281_v22, %v277_v14 }
  0xa3   : > { %v294_v24 = vadd.f32 0.112945676, %v293_v23  ;;  %v283_v28 = vadd.f32 0.05243302, %v282_v25 }
  0xa5   : > { %v295_v26 = vmul.f32 %v294_v24, %v277_v14  ;;  %v284_v31 = vmul.f32 %v283_v28, %v277_v14 }
  0xa7   : > { %v296_v27 = vadd.f32 0.4994258, %v295_v26  ;;  %v285_v32 = vadd.f32 0.18741608, %v284_v31 }
  0xa9   : > { %v297_v29 = vmul.f32 %v296_v27, %v277_v14  ;;  %v286_v34 = vmul.f32 %v285_v32, %v277_v14 }
  0xab   : > { %v298_v30 = vadd.f32 1.0, %v297_v29  ;;  %v287_v38 = vadd.f32 1.1283791, %v286_v34 }
  0xad   : > { %631 = vrcp.f32 %v298_v30  ;;  %v310_v37 = vand.u32 2147483648, %v298_v30  ;;  %v308_v40 = vand.u32 2147483647, %v298_v30  ;;  %vm304_vm1 = vweird.f32 %v298_v30 }
  0xae   : > { %v288_v43 = vmul.f32 %v287_v38, %v275_v12 }
  0xaf   : > { %v311_v42 = vor.u32 1.1754944e-38, %v310_v37  ;;  %vm309_vm3 = vcmp.eq.f32.partialorder %v308_v40, 8.507059e+37 }
  0xb3   : > { %v632_v33 = vpop.eup %631 }
  0xb4   : > { %v300_v35 = vmul.f32 %v632_v33, %v298_v30  ;;  %vm305_vm0 = vweird.f32 %v632_v33 }
  0xb5   : > { %vm306_vm2 = vmor %vm304_vm1, %vm305_vm0 }
  0xb6   : > { %v301_v36 = vsub.f32 1.0, %v300_v35 }
  0xb8   : > { %v302_v39 = vmul.f32 %v632_v33, %v301_v36 }
  0xba   : > { %v303_v41 = vadd.f32 %v632_v33, %v302_v39 }
  0xbc   : > { %v307_v44 = vsel %vm306_vm2, %v632_v33, %v303_v41 }
  0xbd   : > { %v312_v45 = vsel %vm309_vm3, %v311_v42, %v307_v44 }
  0xbe   : > { %v313_v46 = vmul.f32 %v312_v45, %v288_v43 }
  0xc0   : > { %v565_v47 = vclamps-f32 %v313_v46, 1.0  ;;  %321 = sbr.rel (%p566_p7) target bundleno = 216 (0xd8), region = 48 }
  0xc2   : > { %v316_v49 = vadd.f32 1.0, %v565_v47 }
  0xc4   : > { %v813_v50 = vmul.f32 %v316_v49, %v274_v48 }
  0xc5   : > { %vm326_vm4 = vcmask 516096   ;;  %vm330_vm5 = vcmask 523264   ;;  %v732_v52 = vmov 0.0  }
  0xc6   : > { %v342_v51 = vmul.f32 %v813_v50, %v813_v50  ;;  %327 = vst.msk [vmem:[#allocation2] sm:$0x1] %vm326_vm4, %v732_v52  ;;  %v331_v53 = vsel %vm330_vm5, %v813_v50, 0.0 }
  0xc7   : > { %328 = vst.msk [vmem:[#allocation3] sm:$0x1] %vm326_vm4, %v732_v52  ;;  %v332_v54 = vrot.slane %v331_v53, 4 }
  0xc8   : > { %v343_v55 = vsel %vm330_vm5, %v342_v51, 0.0 }
  0xc9   : > { %v344_v56 = vrot.slane %v343_v55, 4  ;;  %v333_v57 = vadd.f32 %v332_v54, %v331_v53 }
  0xcb   : > { %v345_v58 = vadd.f32 %v344_v56, %v343_v55  ;;  %v334_v59 = vrot.slane %v333_v57, 2 }
  0xcd   : > { %v346_v60 = vrot.slane %v345_v58, 2  ;;  %v335_v61 = vadd.f32 %v334_v59, %v333_v57  ;;  %v329_v0 = vld [vmem:[#allocation2] sm:$0x1] }
  0xce   : > { %v341_v3 = vld [vmem:[#allocation3] sm:$0x1] }
  0xcf   : > { %v347_v62 = vadd.f32 %v346_v60, %v345_v58  ;;  %v336_v63 = vrot.slane %v335_v61, 1 }
  0xd1   : > { %v348_v1 = vrot.slane %v347_v62, 1  ;;  %v337_v2 = vadd.f32 %v336_v63, %v335_v61 }
  0xd3   : > { %v349_v4 = vadd.f32 %v348_v1, %v347_v62  ;;  %v338_v5 = vadd.f32 %v337_v2, %v329_v0 }
  0xd5   : > { %v350_v6 = vadd.f32 %v349_v4, %v341_v3  ;;  %340 = vst.msk [vmem:[#allocation2] sm:$0x1] %vm326_vm4, %v338_v5 }
  0xd7   : > { %351 = vst.msk [vmem:[#allocation3] sm:$0x1] %vm326_vm4, %v350_v6 }
  0xd8 PF: > { %p567_p8 = scmp.ne.s32.totalorder %s717_s18, 1 }
  0xda   : > { %355 = sbr.rel (%p567_p8) target bundleno = 396 (0x18c), region = 56 }
  0xdf   : > { %v390_v7 = vld [vmem:[#allocation6 + $0x38] sm:$0xff]  ;;  %v389_v8 = vld [vmem:[#allocation6 + $0x30] sm:$0xff]  ;;  %v388_v9 = vld [vmem:[#allocation6 + $0x28] sm:$0xff]  ;;  %vm378_vm9 = vcmask 516096   ;;  %vm391_vm10 = vcmask 523264  }
  0xe0   : > { %402 = vmatpush.msra.mxu0 %v390_v7  ;;  %446 = vmatpush.msra.mxu1 %v390_v7  ;;  %v360_v10 = vld [vmem:[#allocation2] sm:$0x1]  ;;  %v362_v12 = vld [vmem:[#allocation3] sm:$0x1]  ;;  %v387_v13 = vld [vmem:[#allocation6 + $0x20] sm:$0xff] }
  0xe1   : > { %v361_v11 = vmul.f32 0.125, %v360_v10  ;;  %v363_v14 = vmul.f32 0.125, %v362_v12  ;;  %v386_v16 = vld [vmem:[#allocation6 + $0x18] sm:$0xff]  ;;  %v385_v18 = vld [vmem:[#allocation6 + $0x10] sm:$0xff]  ;;  %v384_v20 = vld [vmem:[#allocation6 + $0x8] sm:$0xff] }
  0xe2   : > { %403 = vmatpush.msra.mxu0 %v389_v8  ;;  %447 = vmatpush.msra.mxu1 %v389_v8  ;;  %v383_v22 = vld [vmem:[#allocation6] sm:$0xff]  ;;  %v414_v34 = vld [vmem:[%s849_s4] sm:$0x1] }
  0xe3   : > { %v364_v15 = vmul.f32 %v361_v11, %v361_v11 }
  0xe4   : > { %404 = vmatpush.msra.mxu0 %v388_v9  ;;  %448 = vmatpush.msra.mxu1 %v388_v9 }
  0xe5   : > { %v365_v17 = vsub.f32 %v363_v14, %v364_v15 }
  0xe6   : > { %405 = vmatpush.msra.mxu0 %v387_v13  ;;  %449 = vmatpush.msra.mxu1 %v387_v13 }
  0xe7   : > { %v366_v19 = vmax.f32 %v365_v17, 0.0 }
  0xe8   : > { %406 = vmatpush.msra.mxu0 %v386_v16  ;;  %450 = vmatpush.msra.mxu1 %v386_v16 }
  0xe9   : > { %v367_v21 = vadd.f32 1e-05, %v366_v19 }
  0xea   : > { %407 = vmatpush.msra.mxu0 %v385_v18  ;;  %451 = vmatpush.msra.mxu1 %v385_v18 }
  0xeb   : > { %635 = vrsqrt.f32 %v367_v21  ;;  %vm374_vm6 = vweird.f32 %v367_v21 }
  0xec   : > { %408 = vmatpush.msra.mxu0 %v384_v20  ;;  %452 = vmatpush.msra.mxu1 %v384_v20 }
  0xee   : > { %409 = vmatpush.msra.mxu0 %v383_v22  ;;  %453 = vmatpush.msra.mxu1 %v383_v22 }
  0xf1   : > { %v636_v23 = vpop.eup %635 }
  0xf2   : > { %v369_v24 = vmul.f32 %v636_v23, %v367_v21  ;;  %vm375_vm7 = vweird.f32 %v636_v23 }
  0xf3   : > { %vm376_vm8 = vmor %vm374_vm6, %vm375_vm7 }
  0xf4   : > { %v370_v25 = vmul.f32 %v636_v23, %v369_v24 }
  0xf6   : > { %v371_v26 = vmul.f32 0.5, %v370_v25 }
  0xf8   : > { %v372_v27 = vsub.f32 1.5, %v371_v26 }
  0xfa   : > { %v373_v28 = vmul.f32 %v636_v23, %v372_v27 }
  0xfc   : > { %v377_v29 = vsel %vm376_vm8, %v636_v23, %v373_v28 }
  0xfd   : > { %379 = vst.msk [vmem:[#allocation4] sm:$0x1] %vm378_vm9, %v377_v29  ;;  %v380_v30 = vmul.f32 %v377_v29, %v361_v11 }
  0xff   : > { %v382_v31 = vperm.slane %v380_v30, 0 }
 0x101   : > { %568 = vmatmul.msk.f32.vlgmr.msra.gmra.mxu0 %vm391_vm10, %v382_v31 }
 0x104   : > { %v633_v32 = vld [vmem:[#allocation4] ss:$0 sm:$0xff] }
 0x105   : > { %v421_v33 = vmul.f32 %v633_v32, %v813_v50 }
 0x107   : > { %569 = vmatmul.msk.f32.vlgmr.msra.gmra.mxu1 %vm391_vm10, %v421_v33 }
 0x17e   : > { %v411_v35 = vpop.f32.mrf.mxu0 }
 0x17f   : > { %v415_v36 = vsub.f32 %v414_v34, %v411_v35 }
 0x181   : > { %416 = vst.msk [vmem:[#allocation5] sm:$0x1] %vm378_vm9, %v415_v36 }
 0x184   : > { %v455_v37 = vpop.f32.mrf.mxu1 }
 0x188   : > { %v634_v38 = vld [vmem:[#allocation5] ss:$0 sm:$0xff] }
 0x189   : > { %v456_v39 = vadd.f32 %v634_v38, %v455_v37 }
 0x18b   : > { %458 = vst.msk [vmem:[#allocation9] sm:$0xff] %vm391_vm10, %v456_v39 }
 0x18c PF: > { %p592_p9 = scmp.eq.s32.totalorder %s558_s21, 1  ;;  %s475_s24 = sshll.u32 %s850_s5, 4  ;;  %s476_s24 = int_to_ptr.hbm [resolvable:$true] %s475_s24 }
 0x18d   : > { %s733_s25 = smov [#allocation9]  }
 0x18e   : > { %s473_s26 = sshll.u32 %s733_s25, 4  ;;  %s474_s26 = int_to_ptr.vmem [resolvable:$true] %s473_s26 }
 0x18f   : > { %579 = dma.vmem_to_hbm [thread:$0]  (%p592_p9), %s474_s26, 128, %s476_s24, [#allocation8]  }
 0x190 PF: > { %p593_p10 = scmp.ge.s32.totalorder %s725_s20, 2  ;;  %p594_p11 = scmp.eq.s32.totalorder %s559_s22, 1 }
 0x192   : > { %p587_p12 = pnand %p594_p11, %p593_p10 }
 0x194   : > { %p588_p13 = pneg %p587_p12 }
 0x196   : > { %712 = dma.done.wait (%p588_p13), [#allocation8], 128  }
 0x197   : > { %714 = vsyncadd (%p588_p13), [#allocation8], 4294967168  ;;  %s19_s20 = sadd.s32 1, %s725_s20   ;;  %s852_s18 = smov %s721_s19 }
 0x198   : > { %p16_p0 = scmp.ge.s32.totalorder %s19_s20, 4   ;;  %s853_s19 = smov %s855_s23 }
 0x19a   :  { %18 = sbr.rel (!%p16_p0) target bundleno = 4 (0x4), region = 96 }
 0x19f   :  { %494 = vsyncpa [#allocation7], 1 }
 0x1a0   :  { %496 = vsyncpa [#allocation7 + $0x1], 1 }
 0x1a1   :  { %497 = vsyncpa [#allocation8], 1 }
 0x1a2   :  { %499 = vsyncpa [#allocation8 + $0x1], 1 }

</bundles_post_ra>
